<compile_context>
chip_gen: v7x
topology: tpu7x:2x2x1
jax: 0.10.0
libtpu: 0.0.40
codegen_flags: <defaults>
</compile_context>

<pallas_src>
import jax
import jax.numpy as jnp
from jax import lax
from jax.experimental import pallas as pl
from jax.experimental.pallas import tpu as pltpu


def _mdn_kernel(x_ref, w1_ref, w23_ref, gb_ref, alpha_ref, hwb_ref, out_ref):
    eps = 1e-5
    B = x_ref.shape[0]
    H = w1_ref.shape[1]
    K3 = out_ref.shape[1]
    K = K3 // 3
    inv_b = 1.0 / B

    def lin_bn_prelu(h, w, layer):
        gamma = gb_ref[layer:layer + 1, :]        # (1, H)
        beta = gb_ref[3 + layer:4 + layer, :]     # (1, H)
        alpha = alpha_ref[layer]                  # scalar (SMEM)
        y = jnp.dot(h, w, preferred_element_type=jnp.float32)
        # Training-mode BatchNorm1d (biased batch stats), single-pass moments:
        # two independent cross-sublane reductions (y and y*y) instead of a
        # serial reduce -> subtract -> reduce chain.
        mean = jnp.sum(y, axis=0, keepdims=True) * inv_b
        mean2 = jnp.sum(y * y, axis=0, keepdims=True) * inv_b
        var = jnp.maximum(mean2 - mean * mean, 0.0)
        scale = gamma * lax.rsqrt(var + eps)      # EUP slot
        shift = beta - mean * scale
        yn = y * scale + shift
        # PReLU with a single shared parameter per layer.
        return jnp.where(yn >= 0.0, yn, alpha * yn)

    h = lin_bn_prelu(x_ref[...], w1_ref[...], 0)
    h = lin_bn_prelu(h, w23_ref[0], 1)
    h = lin_bn_prelu(h, w23_ref[1], 2)

    # MDN heads. pi consumes the clamped features; mu/sigma share one fused dot.
    zc = jnp.clip(h, -1000.0, 1000.0)
    pi = jnp.dot(zc, hwb_ref[0:H, 0:K], preferred_element_type=jnp.float32)
    pi = pi + hwb_ref[H:H + 1, 0:K]
    ms = jnp.dot(h, hwb_ref[0:H, K:K3], preferred_element_type=jnp.float32)
    ms = ms + hwb_ref[H:H + 1, K:K3]

    # Per-column clip bounds: mu -> [-30, 30], sigma -> [0.01, 100].
    col = lax.broadcasted_iota(jnp.int32, (1, 2 * K), 1)
    lo = jnp.where(col < K, -30.0, 0.01)
    hi = jnp.where(col < K, 30.0, 100.0)
    ms = jnp.clip(ms, lo, hi)

    # Single full-tile store of the (B, 3K) slab [pi | mu | sigma];
    # wrapper reshapes for free.
    out_ref[...] = jnp.concatenate([pi, ms], axis=1)


def pack_mdn_params(w1, w2, w3, gamma, beta, alpha, head_w, head_b):
    """One-time host-side packing of module params into the kernel layout."""
    w23 = jnp.stack([w2, w3], axis=0).astype(jnp.float32)                 # (2, H, H)
    gb = jnp.concatenate([gamma, beta], axis=0).astype(jnp.float32)       # (6, H)
    hw = jnp.concatenate([head_w[0], head_w[1], head_w[2]], axis=1)       # (H, 3K)
    hb = jnp.concatenate([head_b[0], head_b[1], head_b[2]], axis=0)       # (3K,)
    hwb = jnp.concatenate([hw, hb[None, :]], axis=0).astype(jnp.float32)  # (H+1, 3K)
    return (w1.astype(jnp.float32), w23, gb, alpha.astype(jnp.float32), hwb)


@jax.jit
def mukund_mdn_forward(x, w1, w23, gb, alpha, hwb):
    B, D_in = x.shape
    H = w1.shape[1]
    K3 = hwb.shape[1]
    K = K3 // 3

    vmem = pl.BlockSpec(memory_space=pltpu.MemorySpace.VMEM)
    smem = pl.BlockSpec(memory_space=pltpu.MemorySpace.SMEM)

    flops = 2 * B * (D_in * H + 2 * H * H + H * K3)
    bytes_accessed = sum(int(a.size) * 4 for a in (x, w1, w23, gb, alpha, hwb)) + B * K3 * 4
    cost = pl.CostEstimate(flops=flops, transcendentals=3 * H,
                           bytes_accessed=bytes_accessed)

    out = pl.pallas_call(
        _mdn_kernel,
        out_shape=jax.ShapeDtypeStruct((B, K3), jnp.float32),
        in_specs=[vmem, vmem, vmem, vmem, smem, vmem],
        out_specs=vmem,
        cost_estimate=cost,
    )(x, w1, w23, gb, alpha, hwb)
    # (B, 3K) row-major == cat([pi.unsqueeze(1), mu.unsqueeze(1), sigma.unsqueeze(1)], 1)
    return out.reshape(B, 3, K)


def _reference(x, w1, w2, w3, gamma, beta, alpha, head_w, head_b):
    """Pure-JAX reference with PyTorch-faithful two-pass BN statistics."""
    eps = 1e-5

    def lin_bn_prelu(h, w, g, b, a):
        y = h @ w
        mean = jnp.mean(y, axis=0, keepdims=True)
        var = jnp.mean((y - mean) ** 2, axis=0, keepdims=True)
        yn = (y - mean) / jnp.sqrt(var + eps) * g + b
        return jnp.where(yn >= 0.0, yn, a * yn)

    h = lin_bn_prelu(x, w1, gamma[0:1], beta[0:1], alpha[0])
    h = lin_bn_prelu(h, w2, gamma[1:2], beta[1:2], alpha[1])
    h = lin_bn_prelu(h, w3, gamma[2:3], beta[2:3], alpha[2])
    pi = jnp.clip(h, -1000.0, 1000.0) @ head_w[0] + head_b[0]
    mu = jnp.clip(h @ head_w[1] + head_b[1], -30.0, 30.0)
    sg = jnp.clip(h @ head_w[2] + head_b[2], 0.01, 100.0)
    return jnp.stack([pi, mu, sg], axis=1)


if __name__ == "__main__":
    B, D_in, H, K = 8, 16, 32, 5

    key = jax.random.PRNGKey(0)
    ks = jax.random.split(key, 8)

    def unif(k, shape, fan_in):
        bound = 1.0 / jnp.sqrt(jnp.float32(fan_in))
        return jax.random.uniform(k, shape, jnp.float32, -bound, bound)

    x = jax.random.normal(ks[0], (B, D_in), jnp.float32)

    # DefaultNN parameters (Linear weights stored pre-transposed as (in, out)).
    w1 = unif(ks[1], (D_in, H), D_in)
    w2 = unif(ks[2], (H, H), H)
    w3 = unif(ks[3], (H, H), H)
    gamma = jnp.ones((3, H), jnp.float32)        # BatchNorm1d weight
    beta = jnp.zeros((3, H), jnp.float32)        # BatchNorm1d bias
    alpha = jnp.full((3,), 0.25, jnp.float32)    # PReLU init

    # MDN heads (init_type='default'): pi/sigma random, mu weight=0 bias=linspace(-3,3,K)
    pi_w = unif(ks[4], (H, K), H)
    pi_b = unif(ks[5], (K,), H)
    mu_w = jnp.zeros((H, K), jnp.float32)
    mu_b = jnp.linspace(-3.0, 3.0, K, dtype=jnp.float32)
    sg_w = unif(ks[6], (H, K), H)
    sg_b = unif(ks[7], (K,), H)

    head_w = jnp.stack([pi_w, mu_w, sg_w], axis=0)   # (3, H, K)
    head_b = jnp.stack([pi_b, mu_b, sg_b], axis=0)   # (3, K)

    packed = pack_mdn_params(w1, w2, w3, gamma, beta, alpha, head_w, head_b)
    pred = mukund_mdn_forward(x, *packed)
    pred = jax.block_until_ready(pred)

    ref = _reference(x, w1, w2, w3, gamma, beta, alpha, head_w, head_b)
    assert pred.shape == (B, 3, K)
    assert jnp.allclose(pred, ref, atol=1e-4, rtol=1e-4)

    print("KERNEL_OK")
</pallas_src>

<mosaic_0001>
module attributes {stable_mosaic.version = 11 : i64} {
  func.func @_mdn_kernel(%arg0: memref<8x16xf32, #tpu.memory_space<vmem>>, %arg1: memref<16x32xf32, #tpu.memory_space<vmem>>, %arg2: memref<2x32x32xf32, #tpu.memory_space<vmem>>, %arg3: memref<6x32xf32, #tpu.memory_space<vmem>>, %arg4: memref<3xf32, #tpu.memory_space<smem>>, %arg5: memref<33x15xf32, #tpu.memory_space<vmem>>, %arg6: memref<8x15xf32, #tpu.memory_space<vmem>>) attributes {dimension_semantics = [], scalar_prefetch = 0 : i64, scratch_operands = 0 : i64, tpu.core_type = #tpu.core_type<tc>} {
    %c0 = arith.constant 0 : index
    %c0_0 = arith.constant 0 : index
    %0 = vector.load %arg0[%c0, %c0_0] : memref<8x16xf32, #tpu.memory_space<vmem>>, vector<8x16xf32>
    %c0_1 = arith.constant 0 : index
    %c0_2 = arith.constant 0 : index
    %1 = vector.load %arg1[%c0_1, %c0_2] : memref<16x32xf32, #tpu.memory_space<vmem>>, vector<16x32xf32>
    %c0_3 = arith.constant 0 : index
    %c0_4 = arith.constant 0 : index
    %2 = vector.load %arg3[%c0_3, %c0_4] : memref<6x32xf32, #tpu.memory_space<vmem>>, vector<1x32xf32>
    %c3 = arith.constant 3 : index
    %c0_5 = arith.constant 0 : index
    %3 = vector.load %arg3[%c3, %c0_5] : memref<6x32xf32, #tpu.memory_space<vmem>>, vector<1x32xf32>
    %c0_6 = arith.constant 0 : index
    %4 = memref.load %arg4[%c0_6] : memref<3xf32, #tpu.memory_space<smem>>
    %cst = arith.constant dense<0.000000e+00> : vector<8x32xf32>
    %5 = tpu.matmul %0, %1, %cst {dimension_numbers = #tpu.dot_dimension_numbers<[1], [0], [0], [1], [0, 0, 1, 1], [], []>} : vector<8x16xf32>, vector<16x32xf32>, vector<8x32xf32> -> vector<8x32xf32>
    %cst_7 = arith.constant dense<0.000000e+00> : vector<32xf32>
    %6 = vector.multi_reduction <add>, %5, %cst_7 [0] : vector<8x32xf32> to vector<32xf32>
    %7 = vector.shape_cast %6 : vector<32xf32> to vector<1x32xf32>
    %cst_8 = arith.constant 1.250000e-01 : f32
    %8 = vector.broadcast %cst_8 : f32 to vector<1x32xf32>
    %9 = arith.mulf %7, %8 : vector<1x32xf32>
    %10 = arith.mulf %5, %5 : vector<8x32xf32>
    %cst_9 = arith.constant dense<0.000000e+00> : vector<32xf32>
    %11 = vector.multi_reduction <add>, %10, %cst_9 [0] : vector<8x32xf32> to vector<32xf32>
    %12 = vector.shape_cast %11 : vector<32xf32> to vector<1x32xf32>
    %cst_10 = arith.constant 1.250000e-01 : f32
    %13 = vector.broadcast %cst_10 : f32 to vector<1x32xf32>
    %14 = arith.mulf %12, %13 : vector<1x32xf32>
    %15 = arith.mulf %9, %9 : vector<1x32xf32>
    %16 = arith.subf %14, %15 : vector<1x32xf32>
    %cst_11 = arith.constant 0.000000e+00 : f32
    %17 = vector.broadcast %cst_11 : f32 to vector<1x32xf32>
    %18 = arith.maximumf %16, %17 : vector<1x32xf32>
    %cst_12 = arith.constant 9.99999974E-6 : f32
    %19 = vector.broadcast %cst_12 : f32 to vector<1x32xf32>
    %20 = arith.addf %18, %19 : vector<1x32xf32>
    %21 = math.rsqrt %20 : vector<1x32xf32>
    %22 = arith.mulf %2, %21 : vector<1x32xf32>
    %23 = arith.mulf %9, %22 : vector<1x32xf32>
    %24 = arith.subf %3, %23 : vector<1x32xf32>
    %25 = vector.broadcast %22 : vector<1x32xf32> to vector<8x32xf32>
    %26 = arith.mulf %5, %25 : vector<8x32xf32>
    %27 = vector.broadcast %24 : vector<1x32xf32> to vector<8x32xf32>
    %28 = arith.addf %26, %27 : vector<8x32xf32>
    %cst_13 = arith.constant 0.000000e+00 : f32
    %29 = vector.broadcast %cst_13 : f32 to vector<8x32xf32>
    %30 = arith.cmpf oge, %28, %29 : vector<8x32xf32>
    %31 = vector.broadcast %4 : f32 to vector<8x32xf32>
    %32 = arith.mulf %31, %28 : vector<8x32xf32>
    %33 = arith.select %30, %28, %32 : vector<8x32xi1>, vector<8x32xf32>
    %c0_14 = arith.constant 0 : index
    %c0_15 = arith.constant 0 : index
    %c0_16 = arith.constant 0 : index
    %34 = vector.load %arg2[%c0_14, %c0_15, %c0_16] : memref<2x32x32xf32, #tpu.memory_space<vmem>>, vector<1x32x32xf32>
    %35 = vector.shape_cast %34 : vector<1x32x32xf32> to vector<32x32xf32>
    %c1 = arith.constant 1 : index
    %c0_17 = arith.constant 0 : index
    %36 = vector.load %arg3[%c1, %c0_17] : memref<6x32xf32, #tpu.memory_space<vmem>>, vector<1x32xf32>
    %c4 = arith.constant 4 : index
    %c0_18 = arith.constant 0 : index
    %37 = vector.load %arg3[%c4, %c0_18] : memref<6x32xf32, #tpu.memory_space<vmem>>, vector<1x32xf32>
    %c1_19 = arith.constant 1 : index
    %38 = memref.load %arg4[%c1_19] : memref<3xf32, #tpu.memory_space<smem>>
    %cst_20 = arith.constant dense<0.000000e+00> : vector<8x32xf32>
    %39 = tpu.matmul %33, %35, %cst_20 {dimension_numbers = #tpu.dot_dimension_numbers<[1], [0], [0], [1], [0, 0, 1, 1], [], []>} : vector<8x32xf32>, vector<32x32xf32>, vector<8x32xf32> -> vector<8x32xf32>
    %cst_21 = arith.constant dense<0.000000e+00> : vector<32xf32>
    %40 = vector.multi_reduction <add>, %39, %cst_21 [0] : vector<8x32xf32> to vector<32xf32>
    %41 = vector.shape_cast %40 : vector<32xf32> to vector<1x32xf32>
    %cst_22 = arith.constant 1.250000e-01 : f32
    %42 = vector.broadcast %cst_22 : f32 to vector<1x32xf32>
    %43 = arith.mulf %41, %42 : vector<1x32xf32>
    %44 = arith.mulf %39, %39 : vector<8x32xf32>
    %cst_23 = arith.constant dense<0.000000e+00> : vector<32xf32>
    %45 = vector.multi_reduction <add>, %44, %cst_23 [0] : vector<8x32xf32> to vector<32xf32>
    %46 = vector.shape_cast %45 : vector<32xf32> to vector<1x32xf32>
    %cst_24 = arith.constant 1.250000e-01 : f32
    %47 = vector.broadcast %cst_24 : f32 to vector<1x32xf32>
    %48 = arith.mulf %46, %47 : vector<1x32xf32>
    %49 = arith.mulf %43, %43 : vector<1x32xf32>
    %50 = arith.subf %48, %49 : vector<1x32xf32>
    %cst_25 = arith.constant 0.000000e+00 : f32
    %51 = vector.broadcast %cst_25 : f32 to vector<1x32xf32>
    %52 = arith.maximumf %50, %51 : vector<1x32xf32>
    %cst_26 = arith.constant 9.99999974E-6 : f32
    %53 = vector.broadcast %cst_26 : f32 to vector<1x32xf32>
    %54 = arith.addf %52, %53 : vector<1x32xf32>
    %55 = math.rsqrt %54 : vector<1x32xf32>
    %56 = arith.mulf %36, %55 : vector<1x32xf32>
    %57 = arith.mulf %43, %56 : vector<1x32xf32>
    %58 = arith.subf %37, %57 : vector<1x32xf32>
    %59 = vector.broadcast %56 : vector<1x32xf32> to vector<8x32xf32>
    %60 = arith.mulf %39, %59 : vector<8x32xf32>
    %61 = vector.broadcast %58 : vector<1x32xf32> to vector<8x32xf32>
    %62 = arith.addf %60, %61 : vector<8x32xf32>
    %cst_27 = arith.constant 0.000000e+00 : f32
    %63 = vector.broadcast %cst_27 : f32 to vector<8x32xf32>
    %64 = arith.cmpf oge, %62, %63 : vector<8x32xf32>
    %65 = vector.broadcast %38 : f32 to vector<8x32xf32>
    %66 = arith.mulf %65, %62 : vector<8x32xf32>
    %67 = arith.select %64, %62, %66 : vector<8x32xi1>, vector<8x32xf32>
    %c1_28 = arith.constant 1 : index
    %c0_29 = arith.constant 0 : index
    %c0_30 = arith.constant 0 : index
    %68 = vector.load %arg2[%c1_28, %c0_29, %c0_30] : memref<2x32x32xf32, #tpu.memory_space<vmem>>, vector<1x32x32xf32>
    %69 = vector.shape_cast %68 : vector<1x32x32xf32> to vector<32x32xf32>
    %c2 = arith.constant 2 : index
    %c0_31 = arith.constant 0 : index
    %70 = vector.load %arg3[%c2, %c0_31] : memref<6x32xf32, #tpu.memory_space<vmem>>, vector<1x32xf32>
    %c5 = arith.constant 5 : index
    %c0_32 = arith.constant 0 : index
    %71 = vector.load %arg3[%c5, %c0_32] : memref<6x32xf32, #tpu.memory_space<vmem>>, vector<1x32xf32>
    %c2_33 = arith.constant 2 : index
    %72 = memref.load %arg4[%c2_33] : memref<3xf32, #tpu.memory_space<smem>>
    %cst_34 = arith.constant dense<0.000000e+00> : vector<8x32xf32>
    %73 = tpu.matmul %67, %69, %cst_34 {dimension_numbers = #tpu.dot_dimension_numbers<[1], [0], [0], [1], [0, 0, 1, 1], [], []>} : vector<8x32xf32>, vector<32x32xf32>, vector<8x32xf32> -> vector<8x32xf32>
    %cst_35 = arith.constant dense<0.000000e+00> : vector<32xf32>
    %74 = vector.multi_reduction <add>, %73, %cst_35 [0] : vector<8x32xf32> to vector<32xf32>
    %75 = vector.shape_cast %74 : vector<32xf32> to vector<1x32xf32>
    %cst_36 = arith.constant 1.250000e-01 : f32
    %76 = vector.broadcast %cst_36 : f32 to vector<1x32xf32>
    %77 = arith.mulf %75, %76 : vector<1x32xf32>
    %78 = arith.mulf %73, %73 : vector<8x32xf32>
    %cst_37 = arith.constant dense<0.000000e+00> : vector<32xf32>
    %79 = vector.multi_reduction <add>, %78, %cst_37 [0] : vector<8x32xf32> to vector<32xf32>
    %80 = vector.shape_cast %79 : vector<32xf32> to vector<1x32xf32>
    %cst_38 = arith.constant 1.250000e-01 : f32
    %81 = vector.broadcast %cst_38 : f32 to vector<1x32xf32>
    %82 = arith.mulf %80, %81 : vector<1x32xf32>
    %83 = arith.mulf %77, %77 : vector<1x32xf32>
    %84 = arith.subf %82, %83 : vector<1x32xf32>
    %cst_39 = arith.constant 0.000000e+00 : f32
    %85 = vector.broadcast %cst_39 : f32 to vector<1x32xf32>
    %86 = arith.maximumf %84, %85 : vector<1x32xf32>
    %cst_40 = arith.constant 9.99999974E-6 : f32
    %87 = vector.broadcast %cst_40 : f32 to vector<1x32xf32>
    %88 = arith.addf %86, %87 : vector<1x32xf32>
    %89 = math.rsqrt %88 : vector<1x32xf32>
    %90 = arith.mulf %70, %89 : vector<1x32xf32>
    %91 = arith.mulf %77, %90 : vector<1x32xf32>
    %92 = arith.subf %71, %91 : vector<1x32xf32>
    %93 = vector.broadcast %90 : vector<1x32xf32> to vector<8x32xf32>
    %94 = arith.mulf %73, %93 : vector<8x32xf32>
    %95 = vector.broadcast %92 : vector<1x32xf32> to vector<8x32xf32>
    %96 = arith.addf %94, %95 : vector<8x32xf32>
    %cst_41 = arith.constant 0.000000e+00 : f32
    %97 = vector.broadcast %cst_41 : f32 to vector<8x32xf32>
    %98 = arith.cmpf oge, %96, %97 : vector<8x32xf32>
    %99 = vector.broadcast %72 : f32 to vector<8x32xf32>
    %100 = arith.mulf %99, %96 : vector<8x32xf32>
    %101 = arith.select %98, %96, %100 : vector<8x32xi1>, vector<8x32xf32>
    %cst_42 = arith.constant -1.000000e+03 : f32
    %cst_43 = arith.constant 1.000000e+03 : f32
    %102 = vector.broadcast %cst_42 : f32 to vector<8x32xf32>
    %103 = arith.maximumf %102, %101 : vector<8x32xf32>
    %104 = vector.broadcast %cst_43 : f32 to vector<8x32xf32>
    %105 = arith.minimumf %104, %103 : vector<8x32xf32>
    %c0_44 = arith.constant 0 : index
    %c0_45 = arith.constant 0 : index
    %106 = vector.load %arg5[%c0_44, %c0_45] : memref<33x15xf32, #tpu.memory_space<vmem>>, vector<32x5xf32>
    %cst_46 = arith.constant dense<0.000000e+00> : vector<8x5xf32>
    %107 = tpu.matmul %105, %106, %cst_46 {dimension_numbers = #tpu.dot_dimension_numbers<[1], [0], [0], [1], [0, 0, 1, 1], [], []>} : vector<8x32xf32>, vector<32x5xf32>, vector<8x5xf32> -> vector<8x5xf32>
    %c32 = arith.constant 32 : index
    %c0_47 = arith.constant 0 : index
    %108 = vector.load %arg5[%c32, %c0_47] : memref<33x15xf32, #tpu.memory_space<vmem>>, vector<1x5xf32>
    %109 = vector.broadcast %108 : vector<1x5xf32> to vector<8x5xf32>
    %110 = arith.addf %107, %109 : vector<8x5xf32>
    %c0_48 = arith.constant 0 : index
    %c5_49 = arith.constant 5 : index
    %111 = vector.load %arg5[%c0_48, %c5_49] : memref<33x15xf32, #tpu.memory_space<vmem>>, vector<32x10xf32>
    %cst_50 = arith.constant dense<0.000000e+00> : vector<8x10xf32>
    %112 = tpu.matmul %101, %111, %cst_50 {dimension_numbers = #tpu.dot_dimension_numbers<[1], [0], [0], [1], [0, 0, 1, 1], [], []>} : vector<8x32xf32>, vector<32x10xf32>, vector<8x10xf32> -> vector<8x10xf32>
    %c32_51 = arith.constant 32 : index
    %c5_52 = arith.constant 5 : index
    %113 = vector.load %arg5[%c32_51, %c5_52] : memref<33x15xf32, #tpu.memory_space<vmem>>, vector<1x10xf32>
    %114 = vector.broadcast %113 : vector<1x10xf32> to vector<8x10xf32>
    %115 = arith.addf %112, %114 : vector<8x10xf32>
    %116 = tpu.iota {dimensions = array<i32: 1>} : vector<1x10xi32>
    %c5_i32 = arith.constant 5 : i32
    %117 = vector.broadcast %c5_i32 : i32 to vector<1x10xi32>
    %118 = arith.cmpi slt, %116, %117 : vector<1x10xi32>
    %cst_53 = arith.constant -3.000000e+01 : f32
    %cst_54 = arith.constant 0.00999999977 : f32
    %119 = vector.broadcast %cst_53 : f32 to vector<1x10xf32>
    %120 = vector.broadcast %cst_54 : f32 to vector<1x10xf32>
    %121 = arith.select %118, %119, %120 : vector<1x10xi1>, vector<1x10xf32>
    %c5_i32_55 = arith.constant 5 : i32
    %122 = vector.broadcast %c5_i32_55 : i32 to vector<1x10xi32>
    %123 = arith.cmpi slt, %116, %122 : vector<1x10xi32>
    %cst_56 = arith.constant 3.000000e+01 : f32
    %cst_57 = arith.constant 1.000000e+02 : f32
    %124 = vector.broadcast %cst_56 : f32 to vector<1x10xf32>
    %125 = vector.broadcast %cst_57 : f32 to vector<1x10xf32>
    %126 = arith.select %123, %124, %125 : vector<1x10xi1>, vector<1x10xf32>
    %127 = vector.broadcast %121 : vector<1x10xf32> to vector<8x10xf32>
    %128 = arith.maximumf %127, %115 : vector<8x10xf32>
    %129 = vector.broadcast %126 : vector<1x10xf32> to vector<8x10xf32>
    %130 = arith.minimumf %129, %128 : vector<8x10xf32>
    %131 = tpu.concatenate %110, %130 in 1 : vector<8x5xf32>, vector<8x10xf32> -> vector<8x15xf32>
    %c0_58 = arith.constant 0 : index
    %c0_59 = arith.constant 0 : index
    %132 = vector.load %arg6[%c0_58, %c0_59] : memref<8x15xf32, #tpu.memory_space<vmem>>, vector<8x15xf32>
    tpu.vector_store %arg6[%c0_58, %c0_59], %131 {strides = array<i32>} : memref<8x15xf32, #tpu.memory_space<vmem>>, vector<8x15xf32>,
    return
  }
}

</mosaic_0001>

<bundles_post_ra>
// kernel: mukund_mdn_forward.1
= control target key start
LH: loop header
LB: loop body
LE: loop exit
PB: predicated region body
PF: predicated region fallthrough
CT: control target
= control target key end

     0   :  { %11 = vsyncpa [#allocation3], 0  ;;  %s930_s0 = inlined_call_operand.vmem [shape: f32[8,16], index: 0, kind: input, shape index: {}]   ;;  %s931_s1 = inlined_call_operand.vmem [shape: f32[16,32], index: 1, kind: input, shape index: {}]   ;;  %s932_s2 = inlined_call_operand.hbm [shape: f32[2,32,32], index: 2, kind: input, shape index: {}]   ;;  %s933_s3 = inlined_call_operand.vmem [shape: f32[6,32], index: 3, kind: input, shape index: {}]   ;;  %s934_s4 = inlined_call_operand.vmem [shape: f32[3], index: 4, kind: input, shape index: {}]   ;;  %s935_s5 = inlined_call_operand.vmem [shape: f32[33,15], index: 5, kind: input, shape index: {}]   ;;  %s936_s6 = inlined_call_operand.vmem [shape: f32[8,15], index: 6, kind: output, shape index: {}]  }
   0x1   :  { %12 = vsyncpa [#allocation4], 0  ;;  %s782_s21 = smov [#allocation2]   ;;  %s37_s25 = sshll.u32 %s934_s4, 4  ;;  %s38_s25 = int_to_ptr.vmem [resolvable:$true] %s37_s25 }
   0x2   :  { %s22_s22 = sshll.u32 %s782_s21, 4  ;;  %s744_s28 = scalar_lea.hbm %s932_s2, 1024  ;;  %s23_s22 = int_to_ptr.vmem [resolvable:$true] %s22_s22 }
   0x3   :  { %p745_p0 = scmp.ne.s32.totalorder %s932_s2, %s744_s28  ;;  %p748_p1 = scmp.lt.u32.totalorder %s744_s28, %s932_s2 }
   0x5   :  { %p750_p2 = pnand %p748_p1, %p745_p0 }
   0x7   :  { %753 = shalt.err (!%p750_p2)
}
   0x8   :  { %s754_s9 = scalar_lea.vmem %s23_s22, 1024  ;;  %p759_p4 = scmp.lt.s32.totalorder %s23_s22, %s23_s22 }
   0x9   :  { %p755_p3 = scmp.ne.s32.totalorder %s23_s22, %s754_s9  ;;  %p760_p5 = scmp.lt.s32.totalorder %s754_s9, %s754_s9 }
   0xb   :  { %p761_p6 = por %p760_p5, %p759_p4 }
   0xd   :  { %p762_p7 = pnand %p761_p6, %p755_p3 }
   0xf   :  { %765 = shalt.err (!%p762_p7)
}
  0x10   :  { %s783_s4 = smov 128   ;;  %s784_s10 = smov 8  }
  0x11   :  { %28 = dma.hbm_to_vmem [thread:$0]  %s932_s2, 1024, %s23_s22, [#allocation3], %s783_s4, %s783_s4, %s784_s10  }
  0x12   :  { %s766_s13 = scalar_lea.vmem %s38_s25, 16  ;;  %p771_p9 = scmp.lt.s32.totalorder %s38_s25, %s38_s25 }
  0x13   :  { %p767_p8 = scmp.ne.s32.totalorder %s38_s25, %s766_s13  ;;  %p772_p10 = scmp.lt.s32.totalorder %s766_s13, %s766_s13 }
  0x15   :  { %p773_p11 = por %p772_p10, %p771_p9 }
  0x17   :  { %p774_p12 = pnand %p773_p11, %p767_p8 }
  0x19   :  { %777 = shalt.err (!%p774_p12)
}
  0x1a   :  { %s785_s14 = smov [#allocation5]  }
  0x1b   :  { %40 = dma.vmem_to_smem %s38_s25, 16, %s785_s14, [#allocation4]  }
  0x1c   :  { %778 = dma.done.wait [#allocation3], 1024  }
  0x1d   :  { %779 = vsyncadd [#allocation3], 4294966272 }
  0x1e   :  { %780 = dma.done.wait [#allocation4], 16  }
  0x1f   :  { %781 = vsyncadd [#allocation4], 4294967280 }
  0x20   :  { %49 = sfence }
  0x21   :  { %v51_v0 = vld [vmem:[%s931_s1] sm:$0xff]  ;;  %v52_v1 = vld [vmem:[%s931_s1 + $0x8] sm:$0xff]  ;;  %v786_v2 = vmov 0.0|0.0   ;;  %vm787_vm0 = vmmov 0   ;;  %v788_v4 = vmov 0.0   ;;  %vm56_vm1 = vcmask 130048  }
  0x22   :  { %690 = vmatprep.subr.bf16.mxu0 %v786_v2  ;;  %v691_v3 = vpack.c.bf16 %v52_v1, %v51_v0  ;;  %643 = vmatprep.mubr.msk.f32.mxu0 %vm787_vm0, %v788_v4  ;;  %v50_v5 = vld [vmem:[%s930_s0] sm:$0xff]  ;;  %v171_v7 = vld [vmem:[#allocation2 + $0x8] sm:$0xff]  ;;  %v172_v9 = vld [vmem:[#allocation2 + $0x10] sm:$0xff]  ;;  %vm130_vm2 = vcmask 261120   ;;  %v156_v35 = vlaneseq  ;;  %s55_s20 = sld [smem:[#allocation5]]  ;;  %s789_s7 = smov 123  }
  0x23   :  { %693 = vmatprep.subr.bf16.mxu1 %v786_v2  ;;  %654 = vmatprep.mubr.msk.f32.mxu1 %vm787_vm0, %v788_v4  ;;  %v170_v6 = vld [vmem:[#allocation2] sm:$0xff]  ;;  %v173_v10 = vld [vmem:[#allocation2 + $0x18] sm:$0xff]  ;;  %v291_v52 = vld [vmem:[#allocation2 + $0x28] sm:$0xff]  ;;  %s608_s4 = sld [smem:[#allocation5 + $0x1]]  ;;  %s610_s15 = sld [smem:[#allocation5 + $0x2]]  ;;  %vm597_vm7 = vcmask 39936  }
  0x24   :  { %692 = vmatpush3.bf16.msra.mxu0 %v691_v3  ;;  %v694_v8 = vpack.c.bf16 %v171_v7, %v170_v6  ;;  %v697_v11 = vpack.c.bf16 %v173_v10, %v172_v9  ;;  %v157_v36 = vshrl.u32 %v156_v35, 7  ;;  %v53_v37 = vld [vmem:[%s933_s3] sm:$0x1]  ;;  %v54_v41 = vld [vmem:[%s933_s3 + $0x3] sm:$0x1]  ;;  %v292_v54 = vld [vmem:[#allocation2 + $0x30] sm:$0xff] }
  0x25   :  { %699 = vmatprep.subr.bf16.mxu0 %v786_v2  ;;  %v290_v51 = vld [vmem:[#allocation2 + $0x20] sm:$0xff]  ;;  %v293_v55 = vld [vmem:[#allocation2 + $0x38] sm:$0xff]  ;;  %v412_v58 = vld [vmem:[%s935_s5 + $0x8] sm:$0xff]  ;;  %vm599_vm8 = vcmask 121856  }
  0x26   :  { %695 = vmatpush3.bf16.msra.mxu1 %v694_v8  ;;  %v869_v38 = vsub.s32 0, %v157_v36  ;;  %v700_v53 = vpack.c.bf16 %v291_v52, %v290_v51  ;;  %v703_v56 = vpack.c.bf16 %v293_v55, %v292_v54  ;;  %v411_v57 = vld [vmem:[%s935_s5] sm:$0xff]  ;;  %v413_v59 = vld [vmem:[%s935_s5 + $0x10] sm:$0xff]  ;;  %v414_v62 = vld [vmem:[%s935_s5 + $0x18] sm:$0xff] }
  0x27   :  { %644 = vmatmul.mubr.msk.f32.vlgmr.msra.gmra.mrb[0].mxu0 %vm56_vm1, %v50_v5  ;;  %696 = vmatprep.subr.bf16.mxu1 %v786_v2  ;;  %v728_v60 = vpack.i.bf16 %v412_v58, %v411_v57  ;;  %v706_v61 = vpack.c.bf16 %v412_v58, %v411_v57  ;;  %v733_v63 = vpack.i.bf16 %v414_v62, %v413_v59 }
  0x28   :  { %665 = vmatprep.mubr.msk.f32.mxu0 %vm787_vm0, %v788_v4  ;;  %v167_v47 = vstv %s55_s20  ;;  %701 = vmatpush3.bf16.msra.mxu0 %v700_v53  ;;  %v709_v0 = vpack.c.bf16 %v414_v62, %v413_v59 }
  0x29   :  { %702 = vmatprep.subr.bf16.mxu0 %v786_v2  ;;  %729 = vrot.lane.b32.xlu0 %v728_v60, %s789_s7  ;;  %v286_v36 = vstv %s608_s4 }
  0x2a   :  { %698 = vmatpush3.bf16.msra.mxu1 %v697_v11 }
  0x2b   :  { %705 = vmatprep.subr.bf16.mxu1 %v786_v2 }
  0x2c   :  { %704 = vmatpush3.bf16.msra.mxu0 %v703_v56 }
  0x2d   :  { %711 = vmatprep.subr.bf16.mxu0 %v786_v2  ;;  %734 = vrot.lane.b32.xlu0 %v733_v63, %s789_s7 }
  0xfa   :  { %v126_v12 = vpop.f32.mrb[0].mxu0 }
  0xfb   :  { %v131_v13 = vsel %vm130_vm2, %v126_v12, 0.0  ;;  %v139_v14 = vmul.f32 %v126_v12, %v126_v12  ;;  %v645_v15 = vpop.f32.mrb[1].mxu0 }
  0xfc   :  { %v132_v16 = vrot.slane %v131_v13, 4 }
  0xfd   :  { %v140_v17 = vsel %vm130_vm2, %v139_v14, 0.0 }
  0xfe   :  { %v133_v18 = vadd.f32 %v132_v16, %v131_v13  ;;  %v141_v19 = vrot.slane %v140_v17, 4 }
 0x100   :  { %v134_v20 = vrot.slane %v133_v18, 2  ;;  %v142_v21 = vadd.f32 %v141_v19, %v140_v17 }
 0x102   :  { %v135_v22 = vadd.f32 %v134_v20, %v133_v18  ;;  %v143_v23 = vrot.slane %v142_v21, 2 }
 0x104   :  { %v136_v24 = vrot.slane %v135_v22, 1  ;;  %v144_v25 = vadd.f32 %v143_v23, %v142_v21 }
 0x106   :  { %v137_v26 = vadd.f32 %v136_v24, %v135_v22  ;;  %v145_v27 = vrot.slane %v144_v25, 1 }
 0x108   :  { %v138_v28 = vmul.f32 0.125, %v137_v26  ;;  %v146_v29 = vadd.f32 %v145_v27, %v144_v25  ;;  %v174_v26 = vld [vmem:[%s933_s3 + $0x1] sm:$0x1] }
 0x10a   :  { %v147_v30 = vmul.f32 0.125, %v146_v29  ;;  %v148_v31 = vmul.f32 %v138_v28, %v138_v28  ;;  %v175_v29 = vld [vmem:[%s933_s3 + $0x4] sm:$0x1] }
 0x10c   :  { %v149_v32 = vsub.f32 %v147_v30, %v148_v31 }
 0x10e   :  { %v150_v33 = vmax.f32 %v149_v32, 0.0 }
 0x110   :  { %v151_v34 = vadd.f32 1e-05, %v150_v33 }
 0x112   :  { %738 = vrsqrt.f32 %v151_v34 }
 0x11c   :  { %v739_v39 = vpop.eup %738 }
 0x11d   :  { %v153_v40 = vmul.f32 %v739_v39, %v53_v37 }
 0x11f   :  { %v154_v42 = vmul.f32 %v153_v40, %v138_v28  ;;  %v159_v43 = vrot.slane %v153_v40, %v869_v38 }
 0x121   :  { %v155_v44 = vsub.f32 %v54_v41, %v154_v42  ;;  %v160_v45 = vmul.f32 %v159_v43, %v126_v12  ;;  %v730_v41 = vpop.permute.xlu0 %729 }
 0x122   :  { %v732_v42 = vunpack.i.h.bf16 %v730_v41  ;;  %v731_v43 = vunpack.i.l.bf16 %v730_v41 }
 0x123   :  { %v164_v46 = vrot.slane %v155_v44, %v869_v38 }
 0x124   :  { %v712_v44 = vpack.c.bf16 %v732_v42, %v731_v43 }
 0x125   :  { %v165_v48 = vadd.f32 %v164_v46, %v160_v45  ;;  %v735_v45 = vpop.permute.xlu0 %734 }
 0x126   :  { %v737_v46 = vunpack.i.h.bf16 %v735_v45 }
 0x127   :  { %vm166_vm3 = vcmp.ge.f32.partialorder %v165_v48, 0.0  ;;  %v168_v49 = vmul.f32 %v167_v47, %v165_v48  ;;  %v736_v47 = vunpack.i.l.bf16 %v735_v45 }
 0x129   :  { %v169_v50 = vsel %vm166_vm3, %v165_v48, %v168_v49  ;;  %v715_v48 = vpack.c.bf16 %v737_v46, %v736_v47  ;;  %v613_v49 = vld [vmem:[%s935_s5 + $0x20] ss:$0 sm:$0xff] }
 0x12a   :  { %655 = vmatmul.mubr.msk.f32.vlgmr.msra.gmra.mrb[0].mxu1 %vm130_vm2, %v169_v50  ;;  %510 = vrot.lane.b32.xlu1 %v613_v49, %s789_s7 }
 0x12b   :  { %676 = vmatprep.mubr.msk.f32.mxu1 %vm787_vm0, %v788_v4  ;;  %707 = vmatpush3.bf16.msra.mxu1 %v706_v61 }
 0x12c   :  { %708 = vmatprep.subr.bf16.mxu1 %v786_v2 }
 0x12f   :  { %710 = vmatpush3.bf16.msra.mxu1 %v709_v0 }
 0x1fd   :  { %v246_v1 = vpop.f32.mrb[0].mxu1 }
 0x1fe   :  { %v250_v3 = vsel %vm130_vm2, %v246_v1, 0.0  ;;  %v258_v5 = vmul.f32 %v246_v1, %v246_v1  ;;  %v656_v6 = vpop.f32.mrb[1].mxu1 }
 0x1ff   :  { %v251_v7 = vrot.slane %v250_v3, 4 }
 0x200   :  { %v259_v8 = vsel %vm130_vm2, %v258_v5, 0.0 }
 0x201   :  { %v252_v9 = vadd.f32 %v251_v7, %v250_v3  ;;  %v260_v10 = vrot.slane %v259_v8, 4 }
 0x203   :  { %v253_v11 = vrot.slane %v252_v9, 2  ;;  %v261_v12 = vadd.f32 %v260_v10, %v259_v8 }
 0x205   :  { %v254_v13 = vadd.f32 %v253_v11, %v252_v9  ;;  %v262_v14 = vrot.slane %v261_v12, 2  ;;  %v294_v9 = vld [vmem:[%s933_s3 + $0x2] sm:$0x1] }
 0x207   :  { %v255_v15 = vrot.slane %v254_v13, 1  ;;  %v263_v16 = vadd.f32 %v262_v14, %v261_v12  ;;  %v295_v12 = vld [vmem:[%s933_s3 + $0x5] sm:$0x1]  ;;  %s792_s3 = smov 5  }
 0x209   :  { %v256_v17 = vadd.f32 %v255_v15, %v254_v13  ;;  %v264_v18 = vrot.slane %v263_v16, 1 }
 0x20b   :  { %v257_v19 = vmul.f32 0.125, %v256_v17  ;;  %v265_v20 = vadd.f32 %v264_v18, %v263_v16  ;;  %v406_v18 = vstv %s610_s15 }
 0x20d   :  { %v266_v21 = vmul.f32 0.125, %v265_v20  ;;  %v267_v22 = vmul.f32 %v257_v19, %v257_v19 }
 0x20f   :  { %v268_v23 = vsub.f32 %v266_v21, %v267_v22 }
 0x211   :  { %v269_v24 = vmax.f32 %v268_v23, 0.0  ;;  %v587_v23 = vand.u32 127, %v156_v35 }
 0x213   :  { %v270_v25 = vadd.f32 1e-05, %v269_v24  ;;  %vm588_vm6 = vcmp.lt.s32.totalorder %v587_v23, 5  ;;  %v511_v24 = vpop.permute.xlu1 %510 }
 0x215   :  { %740 = vrsqrt.f32 %v270_v25 }
 0x21f   :  { %v741_v27 = vpop.eup %740 }
 0x220   :  { %v272_v28 = vmul.f32 %v741_v27, %v174_v26  ;;  %v790_v26 = vmov 0.01  }
 0x221   :  { %v589_v27 = vsel %vm588_vm6, -30.0, %v790_v26 }
 0x222   :  { %v273_v30 = vmul.f32 %v272_v28, %v257_v19  ;;  %v278_v31 = vrot.slane %v272_v28, %v869_v38 }
 0x224   :  { %v274_v32 = vsub.f32 %v175_v29, %v273_v30  ;;  %v279_v33 = vmul.f32 %v278_v31, %v246_v1  ;;  %v791_v30 = vmov 100.0  }
 0x225   :  { %v590_v31 = vsel %vm588_vm6, 30.0, %v791_v30 }
 0x226   :  { %v283_v34 = vrot.slane %v274_v32, %v869_v38 }
 0x228   :  { %v284_v37 = vadd.f32 %v283_v34, %v279_v33 }
 0x22a   :  { %v287_v39 = vmul.f32 %v286_v36, %v284_v37  ;;  %vm285_vm4 = vcmp.ge.f32.partialorder %v284_v37, 0.0 }
 0x22c   :  { %v288_v40 = vsel %vm285_vm4, %v284_v37, %v287_v39 }
 0x22d   :  { %666 = vmatmul.mubr.msk.f32.vlgmr.msra.gmra.mrb[2].mxu0 %vm130_vm2, %v288_v40 }
 0x22e   :  { %687 = vmatprep.mubr.msk.f32.mxu0 %vm787_vm0, %v788_v4  ;;  %713 = vmatpush3.bf16.msra.mxu0 %v712_v44 }
 0x22f   :  { %714 = vmatprep.subr.bf16.mxu0 %v786_v2 }
 0x232   :  { %716 = vmatpush3.bf16.msra.mxu0 %v715_v48 }
 0x300   :  { %v366_v50 = vpop.f32.mrb[2].mxu0 }
 0x301   :  { %v370_v4 = vsel %vm130_vm2, %v366_v50, 0.0  ;;  %v378_v51 = vmul.f32 %v366_v50, %v366_v50  ;;  %v667_v52 = vpop.f32.mrb[3].mxu0 }
 0x302   :  { %v371_v53 = vrot.slane %v370_v4, 4 }
 0x303   :  { %v379_v54 = vsel %vm130_vm2, %v378_v51, 0.0 }
 0x304   :  { %v372_v55 = vadd.f32 %v371_v53, %v370_v4  ;;  %v380_v56 = vrot.slane %v379_v54, 4 }
 0x306   :  { %v373_v57 = vrot.slane %v372_v55, 2  ;;  %v381_v2 = vadd.f32 %v380_v56, %v379_v54 }
 0x308   :  { %v374_v58 = vadd.f32 %v373_v57, %v372_v55  ;;  %v382_v59 = vrot.slane %v381_v2, 2 }
 0x30a   :  { %v375_v60 = vrot.slane %v374_v58, 1  ;;  %v383_v61 = vadd.f32 %v382_v59, %v381_v2 }
 0x30c   :  { %v376_v62 = vadd.f32 %v375_v60, %v374_v58  ;;  %v384_v63 = vrot.slane %v383_v61, 1 }
 0x30e   :  { %v377_v0 = vmul.f32 0.125, %v376_v62  ;;  %v385_v1 = vadd.f32 %v384_v63, %v383_v61 }
 0x310   :  { %v386_v3 = vmul.f32 0.125, %v385_v1  ;;  %v387_v5 = vmul.f32 %v377_v0, %v377_v0 }
 0x312   :  { %v388_v6 = vsub.f32 %v386_v3, %v387_v5 }
 0x314   :  { %v389_v7 = vmax.f32 %v388_v6, 0.0 }
 0x316   :  { %v390_v8 = vadd.f32 1e-05, %v389_v7 }
 0x318   :  { %742 = vrsqrt.f32 %v390_v8 }
 0x322   :  { %v743_v10 = vpop.eup %742 }
 0x323   :  { %v392_v11 = vmul.f32 %v743_v10, %v294_v9 }
 0x325   :  { %v393_v13 = vmul.f32 %v392_v11, %v377_v0  ;;  %v398_v14 = vrot.slane %v392_v11, %v869_v38 }
 0x327   :  { %v394_v15 = vsub.f32 %v295_v12, %v393_v13  ;;  %v399_v16 = vmul.f32 %v398_v14, %v366_v50 }
 0x329   :  { %v403_v17 = vrot.slane %v394_v15, %v869_v38 }
 0x32b   :  { %v404_v19 = vadd.f32 %v403_v17, %v399_v16 }
 0x32d   :  { %v407_v20 = vmul.f32 %v406_v18, %v404_v19  ;;  %vm405_vm5 = vcmp.ge.f32.partialorder %v404_v19, 0.0 }
 0x32f   :  { %v408_v21 = vsel %vm405_vm5, %v404_v19, %v407_v20 }
 0x330   :  { %v612_v22 = vclamps-f32 %v408_v21, 1000.0  ;;  %688 = vmatmul.mubr.msk.f32.vlgmr.msra.gmra.mrb[4].mxu0 %vm130_vm2, %v408_v21 }
 0x332   :  { %677 = vmatmul.mubr.msk.f32.vlgmr.msra.gmra.mrb[2].mxu1 %vm130_vm2, %v612_v22 }
 0x403   :  { %v582_v25 = vpop.f32.mrb[4].mxu0 }
 0x404   :  { %v583_v28 = vadd.f32 %v582_v25, %v511_v24  ;;  %v689_v29 = vpop.f32.mrb[5].mxu0 }
 0x405   :  { %v489_v38 = vpop.f32.mrb[2].mxu1 }
 0x406   :  { %v591_v32 = vmax.f32 %v589_v27, %v583_v28  ;;  %v678_v33 = vpop.f32.mrb[3].mxu1  ;;  %v490_v36 = vadd.f32 %v613_v49, %v489_v38 }
 0x408   :  { %v592_v34 = vmin.f32 %v590_v31, %v591_v32 }
 0x40a   :  { %594 = vrot.lane.b32.xlu1 %v592_v34, %s792_s3 }
 0x47c   :  { %v595_v37 = vpop.permute.xlu1 %594 }
 0x47d   :  { %v598_v35 = vsel %vm597_vm7, %v490_v36, %v595_v37 }
 0x47e   :  { %600 = vst.msk [vmem:[%s936_s6] sm:$0xff] %vm599_vm8, %v598_v35 }
 0x47f   :  { %605 = vsyncpa [#allocation3], 1 }
 0x480   :  { %606 = vsyncpa [#allocation4], 1 }

</bundles_post_ra>
